<compile_context>
chip_gen: v5e
topology: v5e:2x2
jax: 0.10.0
libtpu: 0.0.40
codegen_flags: <defaults>
</compile_context>

<pallas_src>
import functools

import jax
import jax.numpy as jnp
from jax.experimental import pallas as pl
from jax.experimental.pallas import tpu as pltpu


def _round_up(x: int, m: int) -> int:
    return ((x + m - 1) // m) * m


def _pad_axis(a, axis, new_size):
    """Zero-pad `a` along `axis` up to `new_size` (no-op if already there)."""
    if a.shape[axis] == new_size:
        return a
    pad = [(0, 0)] * a.ndim
    pad[axis] = (0, new_size - a.shape[axis])
    return jnp.pad(a, pad)


def _head_kernel(x_ref, w1_ref, b1_ref, w2_ref, b2_ref, o_ref):
    # x_ref:  [tb, Hp]        batch tile of CLS-token features (lane-dense)
    # w1_ref: [Hp, Ip]        dense weight (in x out), resident across grid
    # b1_ref: [1, Ip]
    # w2_ref: [Ip, Cp]        out_proj weight, class dim padded to 128 lanes
    # b2_ref: [1, Cp]
    # o_ref:  [tb, Cp]        lane-dense output tile
    x = x_ref[...]
    h = jnp.dot(x, w1_ref[...], preferred_element_type=jnp.float32) + b1_ref[...]
    h = jnp.tanh(h)  # activation_fn = "tanh" (standard RoBERTa head); EUP op
    y = jnp.dot(h, w2_ref[...], preferred_element_type=jnp.float32) + b2_ref[...]
    o_ref[...] = y.astype(o_ref.dtype)


@functools.partial(jax.jit, static_argnames=("tb_max",))
def roberta_classification_head(features, w_dense, b_dense, w_out, b_out,
                                *, tb_max: int = 256):
    """features: [B, T, H]; returns logits [B, C]."""
    # CLS-token slice (tiny glue op: [B, H] vs the full [B, T, H] tensor).
    x_cls = features[:, 0, :]
    B, H = x_cls.shape
    inner = w_dense.shape[1]
    C = w_out.shape[1]

    # --- lane-dense padding (no-ops when already 128-aligned) --------------
    H_p = _round_up(max(H, 1), 128)
    I_p = _round_up(max(inner, 1), 128)
    C_p = _round_up(max(C, 1), 128)

    # Batch tile: multiple of 8 sublanes, capped at tb_max (256 default
    # matches the v6e MXU; pass a smaller tb_max on v7x if VMEM-tight).
    tb = min(_round_up(tb_max, 8), _round_up(B, 8))
    B_p = _round_up(B, tb)

    x_p = _pad_axis(_pad_axis(x_cls, 0, B_p), 1, H_p)
    w1_p = _pad_axis(_pad_axis(w_dense, 0, H_p), 1, I_p)
    b1_p = _pad_axis(b_dense, 1, I_p)
    w2_p = _pad_axis(_pad_axis(w_out, 0, I_p), 1, C_p)
    b2_p = _pad_axis(b_out, 1, C_p)

    bytes_f32 = 4
    cost = pl.CostEstimate(
        flops=2 * B_p * (H_p * I_p + I_p * C_p),
        transcendentals=B_p * I_p,  # tanh
        bytes_accessed=bytes_f32 * (x_p.size + w1_p.size + b1_p.size
                                    + w2_p.size + b2_p.size + B_p * C_p),
    )

    out = pl.pallas_call(
        _head_kernel,
        out_shape=jax.ShapeDtypeStruct((B_p, C_p), jnp.float32),
        grid_spec=pltpu.PrefetchScalarGridSpec(
            num_scalar_prefetch=0,
            grid=(B_p // tb,),
            in_specs=[
                # activation tile marches over the batch dim
                pl.BlockSpec((tb, H_p), lambda i: (i, 0)),
                # weights / biases: same block every step -> stay resident
                pl.BlockSpec((H_p, I_p), lambda i: (0, 0)),
                pl.BlockSpec((1, I_p), lambda i: (0, 0)),
                pl.BlockSpec((I_p, C_p), lambda i: (0, 0)),
                pl.BlockSpec((1, C_p), lambda i: (0, 0)),
            ],
            out_specs=pl.BlockSpec((tb, C_p), lambda i: (i, 0)),
        ),
        compiler_params=pltpu.CompilerParams(
            dimension_semantics=("parallel",)),
        cost_estimate=cost,
    )(x_p, w1_p, b1_p, w2_p, b2_p)

    # Drop batch padding rows and the lane padding of the class dim.
    return out[:B, :C]


def _reference(features, w_dense, b_dense, w_out, b_out):
    x = features[:, 0, :]
    x = jnp.tanh(x @ w_dense + b_dense)
    return x @ w_out + b_out


if __name__ == "__main__":
    key = jax.random.PRNGKey(0)

    # --- main demo: small, module-consistent shapes -----------------------
    B, T, H = 2, 8, 32          # batch, seq, input_dim
    inner_dim = 32
    num_classes = 4

    k1, k2, k3, k4, k5, k6 = jax.random.split(key, 6)
    features = jax.random.normal(k1, (B, T, H), dtype=jnp.float32)
    # nn.Linear(input_dim, inner_dim): weight stored transposed [H, inner]
    w_dense = 0.02 * jax.random.normal(k2, (H, inner_dim), dtype=jnp.float32)
    b_dense = 0.01 * jax.random.normal(k3, (1, inner_dim), dtype=jnp.float32)
    # nn.Linear(inner_dim, num_classes): stored transposed [inner, C]
    w_out = 0.02 * jax.random.normal(k4, (inner_dim, num_classes), dtype=jnp.float32)
    b_out = 0.01 * jax.random.normal(k5, (1, num_classes), dtype=jnp.float32)

    logits = roberta_classification_head(features, w_dense, b_dense, w_out, b_out)
    logits = jax.block_until_ready(logits)
    ref = _reference(features, w_dense, b_dense, w_out, b_out)
    assert logits.shape == (B, num_classes)
    assert jnp.allclose(logits, ref, atol=1e-5, rtol=1e-5)

    # --- second check: exercises batch tiling (grid > 1) + batch padding --
    B2, T2, H2, I2, C2 = 20, 4, 128, 64, 3
    ka, kb, kc, kd, ke = jax.random.split(k6, 5)
    f2 = jax.random.normal(ka, (B2, T2, H2), dtype=jnp.float32)
    w1 = 0.02 * jax.random.normal(kb, (H2, I2), dtype=jnp.float32)
    b1 = 0.01 * jax.random.normal(kc, (1, I2), dtype=jnp.float32)
    w2 = 0.02 * jax.random.normal(kd, (I2, C2), dtype=jnp.float32)
    b2 = 0.01 * jax.random.normal(ke, (1, C2), dtype=jnp.float32)

    logits2 = roberta_classification_head(f2, w1, b1, w2, b2, tb_max=8)
    logits2 = jax.block_until_ready(logits2)
    ref2 = _reference(f2, w1, b1, w2, b2)
    assert logits2.shape == (B2, C2)
    assert jnp.allclose(logits2, ref2, atol=1e-5, rtol=1e-5)

    print("KERNEL_OK")
</pallas_src>

<mosaic_0001>
module attributes {stable_mosaic.version = 11 : i64} {
  func.func @_head_kernel(%arg0: i32, %arg1: memref<8x128xf32, #tpu.memory_space<vmem>>, %arg2: memref<128x128xf32, #tpu.memory_space<vmem>>, %arg3: memref<1x128xf32, #tpu.memory_space<vmem>>, %arg4: memref<128x128xf32, #tpu.memory_space<vmem>>, %arg5: memref<1x128xf32, #tpu.memory_space<vmem>>, %arg6: memref<8x128xf32, #tpu.memory_space<vmem>>) attributes {dimension_semantics = [#tpu.dimension_semantics<parallel>], iteration_bounds = array<i64: 1>, scalar_prefetch = 0 : i64, scratch_operands = 0 : i64, tpu.core_type = #tpu.core_type<tc>, window_params = [{transform_indices = @transform_0, window_bounds = array<i64: 8, 128>}, {pipeline_mode = #tpu.pipeline_mode<synchronous>, transform_indices = @transform_1, window_bounds = array<i64: 128, 128>}, {pipeline_mode = #tpu.pipeline_mode<synchronous>, transform_indices = @transform_2, window_bounds = array<i64: 1, 128>}, {pipeline_mode = #tpu.pipeline_mode<synchronous>, transform_indices = @transform_3, window_bounds = array<i64: 128, 128>}, {pipeline_mode = #tpu.pipeline_mode<synchronous>, transform_indices = @transform_4, window_bounds = array<i64: 1, 128>}, {transform_indices = @transform_5, window_bounds = array<i64: 8, 128>}]} {
    %c0 = arith.constant 0 : index
    %c0_0 = arith.constant 0 : index
    %0 = vector.load %arg1[%c0, %c0_0] : memref<8x128xf32, #tpu.memory_space<vmem>>, vector<8x128xf32>
    %c0_1 = arith.constant 0 : index
    %c0_2 = arith.constant 0 : index
    %1 = vector.load %arg2[%c0_1, %c0_2] : memref<128x128xf32, #tpu.memory_space<vmem>>, vector<128x128xf32>
    %cst = arith.constant dense<0.000000e+00> : vector<8x128xf32>
    %2 = tpu.matmul %0, %1, %cst {dimension_numbers = #tpu.dot_dimension_numbers<[1], [0], [0], [1], [0, 0, 1, 1], [], []>} : vector<8x128xf32>, vector<128x128xf32>, vector<8x128xf32> -> vector<8x128xf32>
    %c0_3 = arith.constant 0 : index
    %c0_4 = arith.constant 0 : index
    %3 = vector.load %arg3[%c0_3, %c0_4] : memref<1x128xf32, #tpu.memory_space<vmem>>, vector<1x128xf32>
    %4 = vector.broadcast %3 : vector<1x128xf32> to vector<8x128xf32>
    %5 = arith.addf %2, %4 : vector<8x128xf32>
    %6 = math.tanh %5 : vector<8x128xf32>
    %c0_5 = arith.constant 0 : index
    %c0_6 = arith.constant 0 : index
    %7 = vector.load %arg4[%c0_5, %c0_6] : memref<128x128xf32, #tpu.memory_space<vmem>>, vector<128x128xf32>
    %cst_7 = arith.constant dense<0.000000e+00> : vector<8x128xf32>
    %8 = tpu.matmul %6, %7, %cst_7 {dimension_numbers = #tpu.dot_dimension_numbers<[1], [0], [0], [1], [0, 0, 1, 1], [], []>} : vector<8x128xf32>, vector<128x128xf32>, vector<8x128xf32> -> vector<8x128xf32>
    %c0_8 = arith.constant 0 : index
    %c0_9 = arith.constant 0 : index
    %9 = vector.load %arg5[%c0_8, %c0_9] : memref<1x128xf32, #tpu.memory_space<vmem>>, vector<1x128xf32>
    %10 = vector.broadcast %9 : vector<1x128xf32> to vector<8x128xf32>
    %11 = arith.addf %8, %10 : vector<8x128xf32>
    %c0_10 = arith.constant 0 : index
    %c0_11 = arith.constant 0 : index
    %12 = vector.load %arg6[%c0_10, %c0_11] : memref<8x128xf32, #tpu.memory_space<vmem>>, vector<8x128xf32>
    tpu.vector_store %arg6[%c0_10, %c0_11], %11 {strides = array<i32>} : memref<8x128xf32, #tpu.memory_space<vmem>>, vector<8x128xf32>,
    return
  }
  func.func @transform_0(%arg0: i32) -> (i32, i32) {
    %c0_i32 = arith.constant 0 : i32
    %c0_i32_0 = arith.constant 0 : i32
    return %arg0, %c0_i32 : i32, i32
  }
  func.func @transform_1(%arg0: i32) -> (i32, i32) {
    %c0_i32 = arith.constant 0 : i32
    %c0_i32_0 = arith.constant 0 : i32
    %c0_i32_1 = arith.constant 0 : i32
    return %c0_i32, %c0_i32_0 : i32, i32
  }
  func.func @transform_2(%arg0: i32) -> (i32, i32) {
    %c0_i32 = arith.constant 0 : i32
    %c0_i32_0 = arith.constant 0 : i32
    %c0_i32_1 = arith.constant 0 : i32
    return %c0_i32, %c0_i32_0 : i32, i32
  }
  func.func @transform_3(%arg0: i32) -> (i32, i32) {
    %c0_i32 = arith.constant 0 : i32
    %c0_i32_0 = arith.constant 0 : i32
    %c0_i32_1 = arith.constant 0 : i32
    return %c0_i32, %c0_i32_0 : i32, i32
  }
  func.func @transform_4(%arg0: i32) -> (i32, i32) {
    %c0_i32 = arith.constant 0 : i32
    %c0_i32_0 = arith.constant 0 : i32
    %c0_i32_1 = arith.constant 0 : i32
    return %c0_i32, %c0_i32_0 : i32, i32
  }
  func.func @transform_5(%arg0: i32) -> (i32, i32) {
    %c0_i32 = arith.constant 0 : i32
    %c0_i32_0 = arith.constant 0 : i32
    return %arg0, %c0_i32 : i32, i32
  }
}

</mosaic_0001>

<bundles_post_ra>
// kernel: roberta_classification_head.1
= control target key start
LH: loop header
LB: loop body
LE: loop exit
PB: predicated region body
PF: predicated region fallthrough
CT: control target
= control target key end

     0   :  { %s249_s1 = inlined_call_operand.vmem [shape: f32[128,128], index: 1, kind: input, shape index: {}]   ;;  %s250_s3 = inlined_call_operand.vmem [shape: f32[128,128], index: 3, kind: input, shape index: {}]   ;;  %s251_s2 = inlined_call_operand.vmem [shape: f32[1,128], index: 2, kind: input, shape index: {}]   ;;  %s252_s0 = inlined_call_operand.vmem [shape: f32[8,128], index: 0, kind: input, shape index: {}]   ;;  %s253_s4 = inlined_call_operand.vmem [shape: f32[1,128], index: 4, kind: input, shape index: {}]   ;;  %s254_s5 = inlined_call_operand.vmem [shape: f32[8,128], index: 5, kind: output, shape index: {}]  }
   0x1   :  { %v36_v0 = vld [vmem:[%s249_s1 + $0x78] sm:$0xff]  ;;  %v35_v1 = vld [vmem:[%s249_s1 + $0x70] sm:$0xff]  ;;  %v34_v2 = vld [vmem:[%s249_s1 + $0x68] sm:$0xff] }
   0x2   :  { %41 = vmatpush.msra.mxu0 %v36_v0  ;;  %v33_v3 = vld [vmem:[%s249_s1 + $0x60] sm:$0xff]  ;;  %v77_v4 = vld [vmem:[%s250_s3 + $0x78] sm:$0xff]  ;;  %v76_v6 = vld [vmem:[%s250_s3 + $0x70] sm:$0xff] }
   0x3   :  { %v32_v5 = vld [vmem:[%s249_s1 + $0x58] sm:$0xff]  ;;  %82 = vmatpush.msra.mxu1 %v77_v4  ;;  %v75_v7 = vld [vmem:[%s250_s3 + $0x68] sm:$0xff]  ;;  %v31_v8 = vld [vmem:[%s249_s1 + $0x50] sm:$0xff] }
   0x4   :  { %42 = vmatpush.msra.mxu0 %v35_v1  ;;  %v74_v9 = vld [vmem:[%s250_s3 + $0x60] sm:$0xff]  ;;  %v30_v10 = vld [vmem:[%s249_s1 + $0x48] sm:$0xff]  ;;  %v73_v11 = vld [vmem:[%s250_s3 + $0x58] sm:$0xff] }
   0x5   :  { %83 = vmatpush.msra.mxu1 %v76_v6  ;;  %v29_v12 = vld [vmem:[%s249_s1 + $0x40] sm:$0xff]  ;;  %v72_v13 = vld [vmem:[%s250_s3 + $0x50] sm:$0xff]  ;;  %v28_v14 = vld [vmem:[%s249_s1 + $0x38] sm:$0xff] }
   0x6   :  { %43 = vmatpush.msra.mxu0 %v34_v2  ;;  %v71_v15 = vld [vmem:[%s250_s3 + $0x48] sm:$0xff]  ;;  %v27_v16 = vld [vmem:[%s249_s1 + $0x30] sm:$0xff]  ;;  %v70_v17 = vld [vmem:[%s250_s3 + $0x40] sm:$0xff] }
   0x7   :  { %84 = vmatpush.msra.mxu1 %v75_v7  ;;  %v26_v18 = vld [vmem:[%s249_s1 + $0x28] sm:$0xff]  ;;  %v69_v19 = vld [vmem:[%s250_s3 + $0x38] sm:$0xff]  ;;  %v25_v20 = vld [vmem:[%s249_s1 + $0x20] sm:$0xff] }
   0x8   :  { %44 = vmatpush.msra.mxu0 %v33_v3  ;;  %v68_v21 = vld [vmem:[%s250_s3 + $0x30] sm:$0xff]  ;;  %v24_v22 = vld [vmem:[%s249_s1 + $0x18] sm:$0xff]  ;;  %v67_v23 = vld [vmem:[%s250_s3 + $0x28] sm:$0xff] }
   0x9   :  { %85 = vmatpush.msra.mxu1 %v74_v9  ;;  %v23_v24 = vld [vmem:[%s249_s1 + $0x10] sm:$0xff]  ;;  %v22_v25 = vld [vmem:[%s249_s1 + $0x8] sm:$0xff]  ;;  %v21_v26 = vld [vmem:[%s249_s1] sm:$0xff] }
   0xa   :  { %45 = vmatpush.msra.mxu0 %v32_v5  ;;  %v20_v27 = vld [vmem:[%s252_s0] sm:$0xff]  ;;  %v65_v29 = vld [vmem:[%s250_s3 + $0x18] sm:$0xff]  ;;  %v64_v30 = vld [vmem:[%s250_s3 + $0x10] sm:$0xff] }
   0xb   :  { %86 = vmatpush.msra.mxu1 %v73_v11  ;;  %v66_v28 = vld [vmem:[%s250_s3 + $0x20] sm:$0xff]  ;;  %v63_v31 = vld [vmem:[%s250_s3 + $0x8] sm:$0xff] }
   0xc   :  { %46 = vmatpush.msra.mxu0 %v31_v8  ;;  %v62_v32 = vld [vmem:[%s250_s3] sm:$0xff] }
   0xd   :  { %87 = vmatpush.msra.mxu1 %v72_v13  ;;  %v107_v33 = vld [vmem:[%s251_s2] ss:$0 sm:$0xff] }
   0xe   :  { %47 = vmatpush.msra.mxu0 %v30_v10  ;;  %v108_v37 = vld [vmem:[%s253_s4] ss:$0 sm:$0xff] }
   0xf   :  { %88 = vmatpush.msra.mxu1 %v71_v15 }
  0x10   :  { %48 = vmatpush.msra.mxu0 %v29_v12 }
  0x11   :  { %89 = vmatpush.msra.mxu1 %v70_v17 }
  0x12   :  { %49 = vmatpush.msra.mxu0 %v28_v14 }
  0x13   :  { %90 = vmatpush.msra.mxu1 %v69_v19 }
  0x14   :  { %50 = vmatpush.msra.mxu0 %v27_v16 }
  0x15   :  { %91 = vmatpush.msra.mxu1 %v68_v21 }
  0x16   :  { %51 = vmatpush.msra.mxu0 %v26_v18 }
  0x17   :  { %92 = vmatpush.msra.mxu1 %v67_v23 }
  0x18   :  { %52 = vmatpush.msra.mxu0 %v25_v20 }
  0x19   :  { %93 = vmatpush.msra.mxu1 %v66_v28 }
  0x1a   :  { %53 = vmatpush.msra.mxu0 %v24_v22 }
  0x1b   :  { %94 = vmatpush.msra.mxu1 %v65_v29 }
  0x1c   :  { %54 = vmatpush.msra.mxu0 %v23_v24 }
  0x1d   :  { %95 = vmatpush.msra.mxu1 %v64_v30 }
  0x1e   :  { %55 = vmatpush.msra.mxu0 %v22_v25 }
  0x1f   :  { %96 = vmatpush.msra.mxu1 %v63_v31 }
  0x20   :  { %56 = vmatpush.msra.mxu0 %v21_v26 }
  0x21   :  { %57 = vmatmul.f32.vlgmr.msra.gmra.mxu0 %v20_v27  ;;  %97 = vmatpush.msra.mxu1 %v62_v32 }
  0x9e   :  { %v58_v34 = vpop.f32.mrf.mxu0 }
  0x9f   :  { %v59_v35 = vadd.f32 %v107_v33, %v58_v34 }
  0xa1   :  { %109 = vtanh.f32 %v59_v35 }
  0xa7   :  { %v110_v36 = vpop.eup %109 }
  0xa8   :  { %98 = vmatmul.f32.vlgmr.msra.gmra.mxu1 %v110_v36 }
 0x125   :  { %v99_v38 = vpop.f32.mrf.mxu1 }
 0x126   :  { %v100_v39 = vadd.f32 %v108_v37, %v99_v38 }
 0x128   :  { %102 = vst [vmem:[%s254_s5] sm:$0xff] %v100_v39 }

</bundles_post_ra>
